<compile_context>
chip_gen: v6e
topology: v6e:2x2x1
jax: 0.10.0
libtpu: 0.0.40
codegen_flags: <defaults>
</compile_context>

<pallas_src>
import jax
import jax.numpy as jnp
from jax.experimental import pallas as pl
from jax.experimental.pallas import tpu as pltpu


def _round_up(x, m):
    return ((x + m - 1) // m) * m


def _make_actor_kernel(act_dim):
    """Kernel closure over the (static) action dimension."""

    def kernel(x_ref, w1_ref, b1_ref, w2_ref, b2_ref, wh_ref, bh_ref, o_ref):
        x = x_ref[...]
        # fc1 + ReLU
        h1 = jnp.dot(x, w1_ref[...], preferred_element_type=jnp.float32) + b1_ref[...]
        h1 = jnp.maximum(h1, 0.0)
        # fc2 + ReLU
        h2 = jnp.dot(h1, w2_ref[...], preferred_element_type=jnp.float32) + b2_ref[...]
        h2 = jnp.maximum(h2, 0.0)
        # Fused head: columns [0, act_dim) = mu, [act_dim, 2*act_dim) = logstd,
        # remaining columns are zero padding (lane-dense output slab).
        head = jnp.dot(h2, wh_ref[...], preferred_element_type=jnp.float32) + bh_ref[...]
        col = jax.lax.broadcasted_iota(jnp.int32, head.shape, 1)
        is_logstd = jnp.logical_and(col >= act_dim, col < 2 * act_dim)
        # std = exp(logstd) only for the logstd columns; mu columns pass through.
        o_ref[...] = jnp.where(is_logstd, jnp.exp(head), head)

    return kernel


def actor_forward(state, params, *, block_batch=None):
    """Pallas implementation of Actor.forward(state) -> (mu, std)."""
    w1, b1, w2, b2, wmu, bmu, wls, bls = params
    state = state.astype(jnp.float32)
    batch, obs_dim = state.shape
    hidden = w1.shape[1]
    act_dim = wmu.shape[1]

    # Fuse fc_mu / fc_logstd into one head, padded to a 128-lane multiple so
    # the single head matmul output (and its store) is lane-dense.
    head_n = _round_up(max(2 * act_dim, 128), 128)
    wh = jnp.zeros((hidden, head_n), jnp.float32)
    wh = wh.at[:, :act_dim].set(wmu.astype(jnp.float32))
    wh = wh.at[:, act_dim:2 * act_dim].set(wls.astype(jnp.float32))
    bh = jnp.zeros((1, head_n), jnp.float32)
    bh = bh.at[:, :act_dim].set(bmu.astype(jnp.float32))
    bh = bh.at[:, act_dim:2 * act_dim].set(bls.astype(jnp.float32))

    # Batch tile: 256-multiple friendly for v6e/v7x MXU at large batch, but do
    # not over-pad tiny demo batches (just align to 8 sublanes).
    tm = block_batch if block_batch is not None else min(256, _round_up(batch, 8))
    tm = _round_up(tm, 8)
    batch_pad = _round_up(batch, tm)
    if batch_pad != batch:
        state = jnp.pad(state, ((0, batch_pad - batch), (0, 0)))

    grid = (batch_pad // tm,)

    out = pl.pallas_call(
        _make_actor_kernel(act_dim),
        out_shape=jax.ShapeDtypeStruct((batch_pad, head_n), jnp.float32),
        grid_spec=pltpu.PrefetchScalarGridSpec(
            num_scalar_prefetch=0,
            grid=grid,
            in_specs=[
                # Only the state tile moves per grid step.
                pl.BlockSpec((tm, obs_dim), lambda i: (i, 0)),
                # Weights / biases: constant index_map -> resident in VMEM.
                pl.BlockSpec(w1.shape, lambda i: (0, 0)),
                pl.BlockSpec(b1.shape, lambda i: (0, 0)),
                pl.BlockSpec(w2.shape, lambda i: (0, 0)),
                pl.BlockSpec(b2.shape, lambda i: (0, 0)),
                pl.BlockSpec((hidden, head_n), lambda i: (0, 0)),
                pl.BlockSpec((1, head_n), lambda i: (0, 0)),
            ],
            out_specs=pl.BlockSpec((tm, head_n), lambda i: (i, 0)),
        ),
        compiler_params=pltpu.CompilerParams(
            dimension_semantics=("parallel",)),
    )(state, w1, b1, w2, b2, wh, bh)

    mu = out[:batch, :act_dim]
    std = out[:batch, act_dim:2 * act_dim]
    return mu, std


def init_actor_params(key, obs_dim, act_dim, hidden_dim=512):
    """Deterministic synthetic init (PyTorch nn.Linear-like uniform bounds)."""
    ks = jax.random.split(key, 8)

    def uni(k, shape, fan_in):
        bound = 1.0 / jnp.sqrt(fan_in)
        return jax.random.uniform(k, shape, jnp.float32, -bound, bound)

    w1 = uni(ks[0], (obs_dim, hidden_dim), obs_dim)
    b1 = uni(ks[1], (1, hidden_dim), obs_dim)
    w2 = uni(ks[2], (hidden_dim, hidden_dim), hidden_dim)
    b2 = uni(ks[3], (1, hidden_dim), hidden_dim)
    wmu = uni(ks[4], (hidden_dim, act_dim), hidden_dim)
    bmu = uni(ks[5], (1, act_dim), hidden_dim)
    wls = uni(ks[6], (hidden_dim, act_dim), hidden_dim)
    bls = uni(ks[7], (1, act_dim), hidden_dim)
    return (w1, b1, w2, b2, wmu, bmu, wls, bls)


def actor_reference(state, params):
    """Pure-JAX reference for correctness check."""
    w1, b1, w2, b2, wmu, bmu, wls, bls = params
    h1 = jnp.maximum(state @ w1 + b1, 0.0)
    h2 = jnp.maximum(h1 @ w2 + b2, 0.0)
    mu = h2 @ wmu + bmu
    std = jnp.exp(h2 @ wls + bls)
    return mu, std


if __name__ == "__main__":
    obs_dim, act_dim, hidden_dim = 12, 4, 32
    batch = 8

    key = jax.random.PRNGKey(0)
    k_params, k_state = jax.random.split(key, 2)

    params = init_actor_params(k_params, obs_dim, act_dim, hidden_dim)
    state = jax.random.normal(k_state, (batch, obs_dim), jnp.float32)

    mu, std = actor_forward(state, params)
    jax.block_until_ready(mu)
    jax.block_until_ready(std)

    mu_ref, std_ref = actor_reference(state, params)
    assert mu.shape == (batch, act_dim), mu.shape
    assert std.shape == (batch, act_dim), std.shape
    assert jnp.allclose(mu, mu_ref, atol=1e-5, rtol=1e-5), (mu, mu_ref)
    assert jnp.allclose(std, std_ref, atol=1e-5, rtol=1e-5), (std, std_ref)

    print("KERNEL_OK")
</pallas_src>

<mosaic_0001>
module attributes {stable_mosaic.version = 11 : i64} {
  func.func @kernel(%arg0: i32, %arg1: memref<8x12xf32, #tpu.memory_space<vmem>>, %arg2: memref<12x32xf32, #tpu.memory_space<vmem>>, %arg3: memref<1x32xf32, #tpu.memory_space<vmem>>, %arg4: memref<32x32xf32, #tpu.memory_space<vmem>>, %arg5: memref<1x32xf32, #tpu.memory_space<vmem>>, %arg6: memref<32x128xf32, #tpu.memory_space<vmem>>, %arg7: memref<1x128xf32, #tpu.memory_space<vmem>>, %arg8: memref<8x128xf32, #tpu.memory_space<vmem>>) attributes {dimension_semantics = [#tpu.dimension_semantics<parallel>], iteration_bounds = array<i64: 1>, scalar_prefetch = 0 : i64, scratch_operands = 0 : i64, tpu.core_type = #tpu.core_type<tc>, window_params = [{transform_indices = @transform_0, window_bounds = array<i64: 8, 12>}, {pipeline_mode = #tpu.pipeline_mode<synchronous>, transform_indices = @transform_1, window_bounds = array<i64: 12, 32>}, {pipeline_mode = #tpu.pipeline_mode<synchronous>, transform_indices = @transform_2, window_bounds = array<i64: 1, 32>}, {pipeline_mode = #tpu.pipeline_mode<synchronous>, transform_indices = @transform_3, window_bounds = array<i64: 32, 32>}, {pipeline_mode = #tpu.pipeline_mode<synchronous>, transform_indices = @transform_4, window_bounds = array<i64: 1, 32>}, {pipeline_mode = #tpu.pipeline_mode<synchronous>, transform_indices = @transform_5, window_bounds = array<i64: 32, 128>}, {pipeline_mode = #tpu.pipeline_mode<synchronous>, transform_indices = @transform_6, window_bounds = array<i64: 1, 128>}, {transform_indices = @transform_7, window_bounds = array<i64: 8, 128>}]} {
    %c0 = arith.constant 0 : index
    %c0_0 = arith.constant 0 : index
    %0 = vector.load %arg1[%c0, %c0_0] : memref<8x12xf32, #tpu.memory_space<vmem>>, vector<8x12xf32>
    %c0_1 = arith.constant 0 : index
    %c0_2 = arith.constant 0 : index
    %1 = vector.load %arg2[%c0_1, %c0_2] : memref<12x32xf32, #tpu.memory_space<vmem>>, vector<12x32xf32>
    %cst = arith.constant dense<0.000000e+00> : vector<8x32xf32>
    %2 = tpu.matmul %0, %1, %cst {dimension_numbers = #tpu.dot_dimension_numbers<[1], [0], [0], [1], [0, 0, 1, 1], [], []>} : vector<8x12xf32>, vector<12x32xf32>, vector<8x32xf32> -> vector<8x32xf32>
    %c0_3 = arith.constant 0 : index
    %c0_4 = arith.constant 0 : index
    %3 = vector.load %arg3[%c0_3, %c0_4] : memref<1x32xf32, #tpu.memory_space<vmem>>, vector<1x32xf32>
    %4 = vector.broadcast %3 : vector<1x32xf32> to vector<8x32xf32>
    %5 = arith.addf %2, %4 : vector<8x32xf32>
    %cst_5 = arith.constant 0.000000e+00 : f32
    %6 = vector.broadcast %cst_5 : f32 to vector<8x32xf32>
    %7 = arith.maximumf %5, %6 : vector<8x32xf32>
    %c0_6 = arith.constant 0 : index
    %c0_7 = arith.constant 0 : index
    %8 = vector.load %arg4[%c0_6, %c0_7] : memref<32x32xf32, #tpu.memory_space<vmem>>, vector<32x32xf32>
    %cst_8 = arith.constant dense<0.000000e+00> : vector<8x32xf32>
    %9 = tpu.matmul %7, %8, %cst_8 {dimension_numbers = #tpu.dot_dimension_numbers<[1], [0], [0], [1], [0, 0, 1, 1], [], []>} : vector<8x32xf32>, vector<32x32xf32>, vector<8x32xf32> -> vector<8x32xf32>
    %c0_9 = arith.constant 0 : index
    %c0_10 = arith.constant 0 : index
    %10 = vector.load %arg5[%c0_9, %c0_10] : memref<1x32xf32, #tpu.memory_space<vmem>>, vector<1x32xf32>
    %11 = vector.broadcast %10 : vector<1x32xf32> to vector<8x32xf32>
    %12 = arith.addf %9, %11 : vector<8x32xf32>
    %cst_11 = arith.constant 0.000000e+00 : f32
    %13 = vector.broadcast %cst_11 : f32 to vector<8x32xf32>
    %14 = arith.maximumf %12, %13 : vector<8x32xf32>
    %c0_12 = arith.constant 0 : index
    %c0_13 = arith.constant 0 : index
    %15 = vector.load %arg6[%c0_12, %c0_13] : memref<32x128xf32, #tpu.memory_space<vmem>>, vector<32x128xf32>
    %cst_14 = arith.constant dense<0.000000e+00> : vector<8x128xf32>
    %16 = tpu.matmul %14, %15, %cst_14 {dimension_numbers = #tpu.dot_dimension_numbers<[1], [0], [0], [1], [0, 0, 1, 1], [], []>} : vector<8x32xf32>, vector<32x128xf32>, vector<8x128xf32> -> vector<8x128xf32>
    %c0_15 = arith.constant 0 : index
    %c0_16 = arith.constant 0 : index
    %17 = vector.load %arg7[%c0_15, %c0_16] : memref<1x128xf32, #tpu.memory_space<vmem>>, vector<1x128xf32>
    %18 = vector.broadcast %17 : vector<1x128xf32> to vector<8x128xf32>
    %19 = arith.addf %16, %18 : vector<8x128xf32>
    %20 = tpu.iota {dimensions = array<i32: 1>} : vector<8x128xi32>
    %c4_i32 = arith.constant 4 : i32
    %21 = vector.broadcast %c4_i32 : i32 to vector<8x128xi32>
    %22 = arith.cmpi sge, %20, %21 : vector<8x128xi32>
    %c8_i32 = arith.constant 8 : i32
    %23 = vector.broadcast %c8_i32 : i32 to vector<8x128xi32>
    %24 = arith.cmpi slt, %20, %23 : vector<8x128xi32>
    %25 = arith.andi %22, %24 : vector<8x128xi1>
    %26 = math.exp %19 : vector<8x128xf32>
    %27 = arith.select %25, %26, %19 : vector<8x128xi1>, vector<8x128xf32>
    %c0_17 = arith.constant 0 : index
    %c0_18 = arith.constant 0 : index
    %28 = vector.load %arg8[%c0_17, %c0_18] : memref<8x128xf32, #tpu.memory_space<vmem>>, vector<8x128xf32>
    tpu.vector_store %arg8[%c0_17, %c0_18], %27 {strides = array<i32>} : memref<8x128xf32, #tpu.memory_space<vmem>>, vector<8x128xf32>,
    return
  }
  func.func @transform_0(%arg0: i32) -> (i32, i32) {
    %c0_i32 = arith.constant 0 : i32
    %c0_i32_0 = arith.constant 0 : i32
    return %arg0, %c0_i32 : i32, i32
  }
  func.func @transform_1(%arg0: i32) -> (i32, i32) {
    %c0_i32 = arith.constant 0 : i32
    %c0_i32_0 = arith.constant 0 : i32
    %c0_i32_1 = arith.constant 0 : i32
    return %c0_i32, %c0_i32_0 : i32, i32
  }
  func.func @transform_2(%arg0: i32) -> (i32, i32) {
    %c0_i32 = arith.constant 0 : i32
    %c0_i32_0 = arith.constant 0 : i32
    %c0_i32_1 = arith.constant 0 : i32
    return %c0_i32, %c0_i32_0 : i32, i32
  }
  func.func @transform_3(%arg0: i32) -> (i32, i32) {
    %c0_i32 = arith.constant 0 : i32
    %c0_i32_0 = arith.constant 0 : i32
    %c0_i32_1 = arith.constant 0 : i32
    return %c0_i32, %c0_i32_0 : i32, i32
  }
  func.func @transform_4(%arg0: i32) -> (i32, i32) {
    %c0_i32 = arith.constant 0 : i32
    %c0_i32_0 = arith.constant 0 : i32
    %c0_i32_1 = arith.constant 0 : i32
    return %c0_i32, %c0_i32_0 : i32, i32
  }
  func.func @transform_5(%arg0: i32) -> (i32, i32) {
    %c0_i32 = arith.constant 0 : i32
    %c0_i32_0 = arith.constant 0 : i32
    %c0_i32_1 = arith.constant 0 : i32
    return %c0_i32, %c0_i32_0 : i32, i32
  }
  func.func @transform_6(%arg0: i32) -> (i32, i32) {
    %c0_i32 = arith.constant 0 : i32
    %c0_i32_0 = arith.constant 0 : i32
    %c0_i32_1 = arith.constant 0 : i32
    return %c0_i32, %c0_i32_0 : i32, i32
  }
  func.func @transform_7(%arg0: i32) -> (i32, i32) {
    %c0_i32 = arith.constant 0 : i32
    %c0_i32_0 = arith.constant 0 : i32
    return %arg0, %c0_i32 : i32, i32
  }
}

</mosaic_0001>

<bundles_post_ra>
// kernel: tpu_custom_call.1
= control target key start
LH: loop header
LB: loop body
LE: loop exit
PB: predicated region body
PF: predicated region fallthrough
CT: control target
= control target key end

     0   :  { %12 = vsyncpa [#allocation3], 0  ;;  %s620_s0 = inlined_call_operand.hbm [shape: f32[8,12], index: 0, kind: input, shape index: {}]   ;;  %s621_s1 = inlined_call_operand.hbm [shape: f32[12,32], index: 1, kind: input, shape index: {}]   ;;  %s622_s2 = inlined_call_operand.vmem [shape: f32[1,32], index: 2, kind: input, shape index: {}]   ;;  %s623_s3 = inlined_call_operand.hbm [shape: f32[32,32], index: 3, kind: input, shape index: {}]   ;;  %s624_s4 = inlined_call_operand.vmem [shape: f32[1,32], index: 4, kind: input, shape index: {}]   ;;  %s625_s5 = inlined_call_operand.hbm [shape: f32[32,128], index: 5, kind: input, shape index: {}]   ;;  %s626_s6 = inlined_call_operand.vmem [shape: f32[1,128], index: 6, kind: input, shape index: {}]   ;;  %s627_s7 = inlined_call_operand.hbm [shape: f32[8,128], index: 7, kind: output, shape index: {}]  }
   0x1   :  { %13 = vsyncpa [#allocation6], 0 }
   0x2   :  { %14 = vsyncpa [#allocation9], 0 }
   0x3   :  { %15 = vsyncpa [#allocation4], 0  ;;  %s533_s24 = smov [#allocation5]  }
   0x4   :  { %s31_s25 = sshll.u32 %s533_s24, 4  ;;  %s32_s25 = int_to_ptr.vmem [resolvable:$true] %s31_s25 }
   0x5   :  { %s433_s26 = scalar_lea.vmem %s32_s25, 256  ;;  %p438_p1 = scmp.lt.s32.totalorder %s32_s25, %s32_s25 }
   0x6   :  { %p434_p0 = scmp.ne.s32.totalorder %s32_s25, %s433_s26  ;;  %p439_p2 = scmp.lt.s32.totalorder %s433_s26, %s433_s26 }
   0x8   :  { %p440_p3 = por %p439_p2, %p438_p1 }
   0xa   :  { %p441_p4 = pnand %p440_p3, %p434_p0 }
   0xc   :  { %444 = shalt.err (!%p441_p4)
}
   0xd   :  { %s534_s27 = smov 128   ;;  %s535_s28 = smov 8  }
   0xe   :  { %37 = dma.hbm_to_vmem [thread:$0]  %s621_s1, 256, %s32_s25, [#allocation6], %s534_s27, %s534_s27, %s535_s28  }
   0xf   :  { %s536_s8 = smov [#allocation2]   ;;  %s537_s10 = smov [#allocation7]  }
  0x10   :  { %s22_s9 = sshll.u32 %s536_s8, 4  ;;  %s45_s11 = sshll.u32 %s537_s10, 4  ;;  %s23_s9 = int_to_ptr.vmem [resolvable:$true] %s22_s9  ;;  %s46_s11 = int_to_ptr.vmem [resolvable:$true] %s45_s11 }
  0x11   :  { %s453_s12 = scalar_lea.vmem %s23_s9, 128  ;;  %p458_p6 = scmp.lt.s32.totalorder %s23_s9, %s23_s9 }
  0x12   :  { %p454_p5 = scmp.ne.s32.totalorder %s23_s9, %s453_s12  ;;  %p459_p7 = scmp.lt.s32.totalorder %s453_s12, %s453_s12 }
  0x14   :  { %p460_p8 = por %p459_p7, %p458_p6 }
  0x16   :  { %p461_p9 = pnand %p460_p8, %p454_p5 }
  0x18   :  { %464 = shalt.err (!%p461_p9)
}
  0x19   :  { %25 = dma.hbm_to_vmem [thread:$0]  %s620_s0, 128, %s23_s9, [#allocation3]  }
  0x1a   :  { %s473_s15 = scalar_lea.vmem %s46_s11, 512  ;;  %p478_p11 = scmp.lt.s32.totalorder %s46_s11, %s46_s11 }
  0x1b   :  { %p474_p10 = scmp.ne.s32.totalorder %s46_s11, %s473_s15  ;;  %p479_p12 = scmp.lt.s32.totalorder %s473_s15, %s473_s15 }
  0x1d   :  { %p480_p13 = por %p479_p12, %p478_p11 }
  0x1f   :  { %p481_p0 = pnand %p480_p13, %p474_p10 }
  0x21   :  { %484 = shalt.err (!%p481_p0)
}
  0x22   :  { %51 = dma.hbm_to_vmem [thread:$0]  %s623_s3, 512, %s46_s11, [#allocation6], %s534_s27, %s534_s27, %s535_s28  }
  0x23   :  { %s538_s17 = smov [#allocation8]  }
  0x24   :  { %s59_s18 = sshll.u32 %s538_s17, 4  ;;  %s60_s18 = int_to_ptr.vmem [resolvable:$true] %s59_s18 }
  0x25   :  { %s493_s19 = scalar_lea.vmem %s60_s18, 512  ;;  %p498_p2 = scmp.lt.s32.totalorder %s60_s18, %s60_s18 }
  0x26   :  { %p494_p1 = scmp.ne.s32.totalorder %s60_s18, %s493_s19  ;;  %p499_p3 = scmp.lt.s32.totalorder %s493_s19, %s493_s19 }
  0x28   :  { %p500_p4 = por %p499_p3, %p498_p2 }
  0x2a   :  { %p501_p5 = pnand %p500_p4, %p494_p1 }
  0x2c   :  { %504 = shalt.err (!%p501_p5)
}
  0x2d   :  { %65 = dma.hbm_to_vmem [thread:$0]  %s625_s5, 512, %s60_s18, [#allocation9], %s534_s27, %s534_s27, %s535_s28  }
  0x2e   :  { %525 = dma.done.wait [#allocation3], 128  }
  0x2f   :  { %526 = vsyncadd [#allocation3], 4294967168 }
  0x30   :  { %527 = dma.done.wait [#allocation6], 768  }
  0x31   :  { %528 = vsyncadd [#allocation6], 4294966528 }
  0x32   :  { %529 = dma.done.wait [#allocation9], 512  }
  0x33   :  { %530 = vsyncadd [#allocation9], 4294966784  ;;  %v539_v0 = vmov 0.0   ;;  %vm540_vm0 = vmmov 0   ;;  %vm94_vm1 = vcmask 1043456   ;;  %v81_v2 = vld [vmem:[#allocation5] sm:$0xff]  ;;  %v339_v27 = vlaneseq }
  0x34   :  { %385 = vmatprep.subr.mxu0 %v539_v0  ;;  %389 = vmatprep.mubr.msk.f32.mxu0 %vm540_vm0, %v539_v0  ;;  %v82_v1 = vld [vmem:[#allocation5 + $0x8] sm:$0xf]  ;;  %v80_v3 = vld [vmem:[#allocation2] sm:$0xff]  ;;  %vm90_vm2 = vcmask 97280   ;;  %v171_v5 = vld [vmem:[#allocation7 + $0x10] sm:$0xff]  ;;  %vm180_vm3 = vcmask 261120  }
  0x35   :  { %392 = vmatprep.subr.mxu1 %v539_v0  ;;  %400 = vmatprep.mubr.msk.f32.mxu1 %vm540_vm0, %v539_v0  ;;  %v172_v4 = vld [vmem:[#allocation7 + $0x18] sm:$0xff]  ;;  %v170_v6 = vld [vmem:[#allocation7 + $0x8] sm:$0xff]  ;;  %v169_v7 = vld [vmem:[#allocation7] sm:$0xff]  ;;  %v340_v28 = vand.u32 127, %v339_v27 }
  0x36   :  { %386 = vmatpush3.msk.msra.mxu0 %vm94_vm1, %v82_v1  ;;  %393 = vmatpush3.msra.mxu1 %v172_v4  ;;  %v258_v8 = vld [vmem:[#allocation8 + $0x18] sm:$0xff]  ;;  %v365_v9 = vld [vmem:[%s622_s2] ss:$0 sm:$0xff]  ;;  %v257_v14 = vld [vmem:[#allocation8 + $0x10] sm:$0xff] }
  0x37   :  { %387 = vmatprep.subr.mxu0 %v539_v0  ;;  %394 = vmatprep.subr.mxu1 %v539_v0  ;;  %v256_v15 = vld [vmem:[#allocation8 + $0x8] sm:$0xff]  ;;  %v255_v16 = vld [vmem:[#allocation8] sm:$0xff]  ;;  %vm341_vm4 = vcmp.ge.s32.totalorder %v340_v28, 4  ;;  %vm342_vm5 = vcmp.lt.s32.totalorder %v340_v28, 8 }
  0x38   :  { %388 = vmatpush3.msra.mxu0 %v81_v2  ;;  %395 = vmatpush3.msra.mxu1 %v171_v5  ;;  %v368_v17 = vld [vmem:[%s624_s4] ss:$0 sm:$0xff]  ;;  %s541_s4 = smov [#allocation10]   ;;  %vm343_vm6 = vmand %vm341_vm4, %vm342_vm5 }
  0x39   :  { %390 = vmatmul.mubr.msk.f32.vlgmr.msra.gmra.mxu0 %vm90_vm2, %v80_v3  ;;  %403 = vmatprep.subr.mxu0 %v539_v0  ;;  %v370_v22 = vld [vmem:[%s626_s6] ss:$0 sm:$0xff]  ;;  %s354_s24 = sshll.u32 %s541_s4, 4  ;;  %s355_s24 = int_to_ptr.vmem [resolvable:$true] %s354_s24 }
  0x3a   :  { %411 = vmatprep.mubr.msk.f32.mxu0 %vm540_vm0, %v539_v0  ;;  %396 = vmatprep.subr.mxu1 %v539_v0  ;;  %s505_s25 = scalar_lea.vmem %s355_s24, 128  ;;  %p510_p7 = scmp.lt.s32.totalorder %s355_s24, %s355_s24 }
  0x3b   :  { %397 = vmatpush3.msra.mxu1 %v170_v6  ;;  %404 = vmatpush3.msra.mxu0 %v258_v8  ;;  %p506_p6 = scmp.ne.s32.totalorder %s355_s24, %s505_s25  ;;  %p511_p8 = scmp.lt.s32.totalorder %s505_s25, %s505_s25 }
  0x3c   :  { %398 = vmatprep.subr.mxu1 %v539_v0  ;;  %405 = vmatprep.subr.mxu0 %v539_v0 }
  0x3d   :  { %399 = vmatpush3.msra.mxu1 %v169_v7  ;;  %406 = vmatpush3.msra.mxu0 %v257_v14  ;;  %p512_p9 = por %p511_p8, %p510_p7 }
  0x3e   :  { %407 = vmatprep.subr.mxu0 %v539_v0 }
  0x3f   :  { %408 = vmatpush3.msra.mxu0 %v256_v15  ;;  %p513_p10 = pnand %p512_p9, %p506_p6 }
  0x40   :  { %409 = vmatprep.subr.mxu0 %v539_v0 }
  0x41   :  { %410 = vmatpush3.msra.mxu0 %v255_v16 }
  0xf9   :  { %v164_v10 = vpop.f32.mrf.mxu0 }
  0xfa   :  { %v165_v11 = vadd.f32 %v365_v9, %v164_v10 }
  0xfb   :  { %v391_v12 = vpop.f32.mrf.mxu0 }
  0xfc   :  { %v168_v13 = vmax.f32 %v165_v11, 0.0 }
  0xfe   :  { %401 = vmatmul.mubr.msk.f32.vlgmr.msra.gmra.mxu1 %vm180_vm3, %v168_v13 }
 0x1be   :  { %v250_v18 = vpop.f32.mrf.mxu1 }
 0x1bf   :  { %v251_v19 = vadd.f32 %v368_v17, %v250_v18 }
 0x1c0   :  { %v402_v20 = vpop.f32.mrf.mxu1 }
 0x1c1   :  { %v254_v21 = vmax.f32 %v251_v19, 0.0 }
 0x1c3   :  { %412 = vmatmul.mubr.msk.f32.vlgmr.msra.gmra.mxu0 %vm180_vm3, %v254_v21 }
 0x283   :  { %v335_v23 = vpop.f32.mrf.mxu0 }
 0x284   :  { %v336_v24 = vadd.f32 %v370_v22, %v335_v23 }
 0x285   :  { %v413_v25 = vpop.f32.mrf.mxu0 }
 0x286   :  { %v344_v26 = vmul.f32 1.442695, %v336_v24 }
 0x288   :  { %423 = vpow2.f32 %v344_v26 }
 0x295   :  { %v424_v29 = vpop.eup %423 }
 0x296   :  { %v346_v30 = vsel %vm343_vm6, %v424_v29, %v336_v24 }
 0x297   :  { %347 = vst [vmem:[#allocation10] sm:$0xff] %v346_v30 }
 0x298   :  { %516 = shalt.err (!%p513_p10)
}
 0x299   :  { %357 = dma.vmem_to_hbm [thread:$0]  %s355_s24, 128, %s627_s7, [#allocation4]  }
 0x29a   :  { %531 = dma.done.wait [#allocation4], 128  }
 0x29b   :  { %532 = vsyncadd [#allocation4], 4294967168 }
 0x29c   :  { %361 = vsyncpa [#allocation3], 1 }
 0x29d   :  { %362 = vsyncpa [#allocation6], 1 }
 0x29e   :  { %363 = vsyncpa [#allocation9], 1 }
 0x29f   :  { %364 = vsyncpa [#allocation4], 1 }

</bundles_post_ra>
